<compile_context>
chip_gen: v5e
topology: v5e:2x2
jax: 0.10.0
libtpu: 0.0.40
codegen_flags: <defaults>
</compile_context>

<pallas_src>
import jax
import jax.numpy as jnp
from jax import lax
from jax.experimental import pallas as pl
from jax.experimental.pallas import tpu as pltpu


def _lstm_cnn_kernel(x_ref, wih_ref, whh_ref, p_ref, out_ref):
    """Single-core kernel: LSTM recurrence with fused ReLU + Linear(H -> 1).

    x_ref:   (T, D)      float32, full sequence in VMEM
    wih_ref: (D, 4H)     input->gates weights, pre-transposed, gate order (i,f,o,g)
    whh_ref: (H, 4H)     hidden->gates weights, pre-transposed, gate order (i,f,o,g)
    p_ref:   (3, 4H)     packed params: row0 = combined bias (b_ih+b_hh, reordered),
                         row1[:H] = final linear weight, row2[0] = final linear bias
    out_ref: (1, T)      lane-dense output row (wrapper reshapes to (T,1,1))
    """
    T = x_ref.shape[0]
    H = whh_ref.shape[0]

    b = p_ref[0:1, :]               # (1, 4H) combined LSTM bias
    wf = p_ref[1:2, 0:H]            # (1, H)  final linear weight
    bf = p_ref[2:3, 0:1]            # (1, 1)  final linear bias

    # Hoisted input projection for ALL timesteps: one (T,D)@(D,4H) matmul + bias.
    xw = (jnp.dot(x_ref[...], wih_ref[...],
                  preferred_element_type=jnp.float32) + b)           # (T, 4H)
    whh = whh_ref[...]                                               # (H, 4H), load once

    # Recurrent state lives in vregs (loop carry), not VMEM scratch.
    h = jnp.zeros((1, H), jnp.float32)
    c = jnp.zeros((1, H), jnp.float32)

    # T is static & small: fully unroll -> cross-step scheduler visibility.
    ys = []
    for t in range(T):
        gates = xw[t:t + 1, :] + jnp.dot(h, whh,
                                         preferred_element_type=jnp.float32)  # (1, 4H)
        # Gate columns were pre-reordered to (i, f, o, g): one sigmoid over the
        # contiguous first 3H lanes, one tanh over the last H lanes.
        sig = jax.nn.sigmoid(gates[:, 0:3 * H])                      # (1, 3H)
        g_g = jnp.tanh(gates[:, 3 * H:4 * H])                        # (1, H)
        i_g = sig[:, 0:H]
        f_g = sig[:, H:2 * H]
        o_g = sig[:, 2 * H:3 * H]
        c = f_g * c + i_g * g_g
        h = o_g * jnp.tanh(c)
        # Fused epilogue: ReLU + Linear(H -> 1) for this step. Off the recurrence
        # critical path (nothing downstream of the loop depends on it), so the
        # VPU mul + XLU lane-reduce fill otherwise-idle slots.
        r = jnp.maximum(h, 0.0)                                      # (1, H)
        ys.append(jnp.sum(r * wf, axis=-1, keepdims=True))           # (1, 1)

    # Single lane-dense store of the whole output row.
    out_ref[...] = jnp.concatenate(ys, axis=-1) + bf                 # (1, T)


def lstm_cnn_forward(inputs, kparams):
    """inputs: (T, D) float32.  Returns (T, 1, 1) matching PyTorch output shape."""
    T, D = inputs.shape
    out_row = pl.pallas_call(
        _lstm_cnn_kernel,
        out_shape=jax.ShapeDtypeStruct((1, T), jnp.float32),
        in_specs=[pl.BlockSpec(memory_space=pltpu.MemorySpace.VMEM)] * 4,
        out_specs=pl.BlockSpec(memory_space=pltpu.MemorySpace.VMEM),
    )(inputs, kparams["wih"], kparams["whh"], kparams["packed"])
    # (1, T) -> (seq, batch=1, 1) to mirror the PyTorch return.
    return out_row.reshape(T, 1, 1)


def _reorder_gates(w):
    """PyTorch gate blocks (i, f, g, o) along axis 0 -> kernel order (i, f, o, g)."""
    H = w.shape[0] // 4
    return jnp.concatenate([w[0:H], w[H:2 * H], w[3 * H:4 * H], w[2 * H:3 * H]],
                           axis=0)


def prepare_params(raw):
    """PyTorch-layout params -> kernel layout (transposed, gates reordered, packed)."""
    H = raw["weight_hh"].shape[1]
    wih = _reorder_gates(raw["weight_ih"]).T                             # (D, 4H)
    whh = _reorder_gates(raw["weight_hh"]).T                             # (H, 4H)
    b = _reorder_gates(raw["bias_ih"] + raw["bias_hh"]).reshape(1, 4 * H)  # (1, 4H)
    wf_row = jnp.pad(raw["final_w"].reshape(1, H).astype(jnp.float32),
                     ((0, 0), (0, 3 * H)))                               # (1, 4H)
    bf_row = jnp.pad(raw["final_b"].reshape(1, 1).astype(jnp.float32),
                     ((0, 0), (0, 4 * H - 1)))                           # (1, 4H)
    packed = jnp.concatenate([b, wf_row, bf_row], axis=0)                # (3, 4H)
    return dict(wih=wih, whh=whh, packed=packed)


def init_params(key, input_dim, hidden_dim):
    """Deterministic synthetic params in PyTorch layout, U(-1/sqrt(H), 1/sqrt(H))."""
    H = hidden_dim
    k = 1.0 / float(H) ** 0.5
    ks = jax.random.split(key, 6)
    return dict(
        weight_ih=jax.random.uniform(ks[0], (4 * H, input_dim), jnp.float32, -k, k),
        weight_hh=jax.random.uniform(ks[1], (4 * H, H), jnp.float32, -k, k),
        bias_ih=jax.random.uniform(ks[2], (4 * H,), jnp.float32, -k, k),
        bias_hh=jax.random.uniform(ks[3], (4 * H,), jnp.float32, -k, k),
        final_w=jax.random.uniform(ks[4], (1, H), jnp.float32, -k, k),
        final_b=jax.random.uniform(ks[5], (1,), jnp.float32, -k, k),
    )


def reference_forward(inputs, raw):
    """Pure-JAX reference of the same forward, in native PyTorch (i,f,g,o) order."""
    H = raw["weight_hh"].shape[1]
    wih = raw["weight_ih"].T
    whh = raw["weight_hh"].T
    b = raw["bias_ih"] + raw["bias_hh"]

    def step(carry, x_t):
        h, c = carry
        gates = x_t @ wih + h @ whh + b
        i = jax.nn.sigmoid(gates[0:H])
        f = jax.nn.sigmoid(gates[H:2 * H])
        g = jnp.tanh(gates[2 * H:3 * H])
        o = jax.nn.sigmoid(gates[3 * H:4 * H])
        c = f * c + i * g
        h = o * jnp.tanh(c)
        return (h, c), h

    (_, _), hs = lax.scan(step, (jnp.zeros(H, jnp.float32),
                                 jnp.zeros(H, jnp.float32)), inputs)
    hr = jnp.maximum(hs, 0.0)
    out = hr @ raw["final_w"].T + raw["final_b"]
    return out.reshape(-1, 1, 1)


if __name__ == "__main__":
    T, D, H = 8, 64, 32      # seq=8, input_dim=64, hidden_dim=32 (small shapes)
    key = jax.random.PRNGKey(0)
    k_x, k_p = jax.random.split(key)
    inputs = jax.random.normal(k_x, (T, D), jnp.float32)
    raw_params = init_params(k_p, D, H)
    kparams = prepare_params(raw_params)

    out = lstm_cnn_forward(inputs, kparams)
    out = jax.block_until_ready(out)

    ref = jax.block_until_ready(reference_forward(inputs, raw_params))
    assert out.shape == (T, 1, 1), out.shape
    assert jnp.allclose(out, ref, atol=1e-4, rtol=1e-4), (
        float(jnp.max(jnp.abs(out - ref))))
    print("KERNEL_OK")
</pallas_src>

<mosaic_0001>
module attributes {stable_mosaic.version = 11 : i64} {
  func.func @_lstm_cnn_kernel(%arg0: memref<8x64xf32, #tpu.memory_space<vmem>>, %arg1: memref<64x128xf32, #tpu.memory_space<vmem>>, %arg2: memref<32x128xf32, #tpu.memory_space<vmem>>, %arg3: memref<3x128xf32, #tpu.memory_space<vmem>>, %arg4: memref<1x8xf32, #tpu.memory_space<vmem>>) attributes {dimension_semantics = [], scalar_prefetch = 0 : i64, scratch_operands = 0 : i64, tpu.core_type = #tpu.core_type<tc>} {
    %c0 = arith.constant 0 : index
    %c0_0 = arith.constant 0 : index
    %0 = vector.load %arg3[%c0, %c0_0] : memref<3x128xf32, #tpu.memory_space<vmem>>, vector<1x128xf32>
    %c1 = arith.constant 1 : index
    %c0_1 = arith.constant 0 : index
    %1 = vector.load %arg3[%c1, %c0_1] : memref<3x128xf32, #tpu.memory_space<vmem>>, vector<1x32xf32>
    %c2 = arith.constant 2 : index
    %c0_2 = arith.constant 0 : index
    %2 = vector.load %arg3[%c2, %c0_2] : memref<3x128xf32, #tpu.memory_space<vmem>>, vector<1x1xf32>
    %c0_3 = arith.constant 0 : index
    %c0_4 = arith.constant 0 : index
    %3 = vector.load %arg0[%c0_3, %c0_4] : memref<8x64xf32, #tpu.memory_space<vmem>>, vector<8x64xf32>
    %c0_5 = arith.constant 0 : index
    %c0_6 = arith.constant 0 : index
    %4 = vector.load %arg1[%c0_5, %c0_6] : memref<64x128xf32, #tpu.memory_space<vmem>>, vector<64x128xf32>
    %cst = arith.constant dense<0.000000e+00> : vector<8x128xf32>
    %5 = tpu.matmul %3, %4, %cst {dimension_numbers = #tpu.dot_dimension_numbers<[1], [0], [0], [1], [0, 0, 1, 1], [], []>} : vector<8x64xf32>, vector<64x128xf32>, vector<8x128xf32> -> vector<8x128xf32>
    %6 = vector.broadcast %0 : vector<1x128xf32> to vector<8x128xf32>
    %7 = arith.addf %5, %6 : vector<8x128xf32>
    %c0_7 = arith.constant 0 : index
    %c0_8 = arith.constant 0 : index
    %8 = vector.load %arg2[%c0_7, %c0_8] : memref<32x128xf32, #tpu.memory_space<vmem>>, vector<32x128xf32>
    %cst_9 = arith.constant 0.000000e+00 : f32
    %9 = vector.broadcast %cst_9 : f32 to vector<1x32xf32>
    %cst_10 = arith.constant 0.000000e+00 : f32
    %10 = vector.broadcast %cst_10 : f32 to vector<1x32xf32>
    %11 = vector.extract_strided_slice %7 {offsets = [0, 0], sizes = [1, 128], strides = [1, 1]} : vector<8x128xf32> to vector<1x128xf32>
    %cst_11 = arith.constant dense<0.000000e+00> : vector<1x128xf32>
    %12 = tpu.matmul %9, %8, %cst_11 {dimension_numbers = #tpu.dot_dimension_numbers<[1], [0], [0], [1], [0, 0, 1, 1], [], []>} : vector<1x32xf32>, vector<32x128xf32>, vector<1x128xf32> -> vector<1x128xf32>
    %13 = arith.addf %11, %12 : vector<1x128xf32>
    %14 = vector.extract_strided_slice %13 {offsets = [0, 0], sizes = [1, 96], strides = [1, 1]} : vector<1x128xf32> to vector<1x96xf32>
    %15 = arith.negf %14 : vector<1x96xf32>
    %16 = math.exp %15 : vector<1x96xf32>
    %cst_12 = arith.constant 1.000000e+00 : f32
    %17 = vector.broadcast %cst_12 : f32 to vector<1x96xf32>
    %18 = arith.addf %17, %16 : vector<1x96xf32>
    %19 = arith.divf %17, %18 : vector<1x96xf32>
    %20 = vector.extract_strided_slice %13 {offsets = [0, 96], sizes = [1, 32], strides = [1, 1]} : vector<1x128xf32> to vector<1x32xf32>
    %21 = math.tanh %20 : vector<1x32xf32>
    %22 = vector.extract_strided_slice %19 {offsets = [0, 0], sizes = [1, 32], strides = [1, 1]} : vector<1x96xf32> to vector<1x32xf32>
    %23 = vector.extract_strided_slice %19 {offsets = [0, 32], sizes = [1, 32], strides = [1, 1]} : vector<1x96xf32> to vector<1x32xf32>
    %24 = vector.extract_strided_slice %19 {offsets = [0, 64], sizes = [1, 32], strides = [1, 1]} : vector<1x96xf32> to vector<1x32xf32>
    %25 = arith.mulf %23, %10 : vector<1x32xf32>
    %26 = arith.mulf %22, %21 : vector<1x32xf32>
    %27 = arith.addf %25, %26 : vector<1x32xf32>
    %28 = math.tanh %27 : vector<1x32xf32>
    %29 = arith.mulf %24, %28 : vector<1x32xf32>
    %cst_13 = arith.constant 0.000000e+00 : f32
    %30 = vector.broadcast %cst_13 : f32 to vector<1x32xf32>
    %31 = arith.maximumf %29, %30 : vector<1x32xf32>
    %32 = arith.mulf %31, %1 : vector<1x32xf32>
    %cst_14 = arith.constant dense<0.000000e+00> : vector<1xf32>
    %33 = vector.multi_reduction <add>, %32, %cst_14 [1] : vector<1x32xf32> to vector<1xf32>
    %34 = vector.shape_cast %33 : vector<1xf32> to vector<1x1xf32>
    %35 = vector.extract_strided_slice %7 {offsets = [1, 0], sizes = [1, 128], strides = [1, 1]} : vector<8x128xf32> to vector<1x128xf32>
    %cst_15 = arith.constant dense<0.000000e+00> : vector<1x128xf32>
    %36 = tpu.matmul %29, %8, %cst_15 {dimension_numbers = #tpu.dot_dimension_numbers<[1], [0], [0], [1], [0, 0, 1, 1], [], []>} : vector<1x32xf32>, vector<32x128xf32>, vector<1x128xf32> -> vector<1x128xf32>
    %37 = arith.addf %35, %36 : vector<1x128xf32>
    %38 = vector.extract_strided_slice %37 {offsets = [0, 0], sizes = [1, 96], strides = [1, 1]} : vector<1x128xf32> to vector<1x96xf32>
    %39 = arith.negf %38 : vector<1x96xf32>
    %40 = math.exp %39 : vector<1x96xf32>
    %cst_16 = arith.constant 1.000000e+00 : f32
    %41 = vector.broadcast %cst_16 : f32 to vector<1x96xf32>
    %42 = arith.addf %41, %40 : vector<1x96xf32>
    %43 = arith.divf %41, %42 : vector<1x96xf32>
    %44 = vector.extract_strided_slice %37 {offsets = [0, 96], sizes = [1, 32], strides = [1, 1]} : vector<1x128xf32> to vector<1x32xf32>
    %45 = math.tanh %44 : vector<1x32xf32>
    %46 = vector.extract_strided_slice %43 {offsets = [0, 0], sizes = [1, 32], strides = [1, 1]} : vector<1x96xf32> to vector<1x32xf32>
    %47 = vector.extract_strided_slice %43 {offsets = [0, 32], sizes = [1, 32], strides = [1, 1]} : vector<1x96xf32> to vector<1x32xf32>
    %48 = vector.extract_strided_slice %43 {offsets = [0, 64], sizes = [1, 32], strides = [1, 1]} : vector<1x96xf32> to vector<1x32xf32>
    %49 = arith.mulf %47, %27 : vector<1x32xf32>
    %50 = arith.mulf %46, %45 : vector<1x32xf32>
    %51 = arith.addf %49, %50 : vector<1x32xf32>
    %52 = math.tanh %51 : vector<1x32xf32>
    %53 = arith.mulf %48, %52 : vector<1x32xf32>
    %cst_17 = arith.constant 0.000000e+00 : f32
    %54 = vector.broadcast %cst_17 : f32 to vector<1x32xf32>
    %55 = arith.maximumf %53, %54 : vector<1x32xf32>
    %56 = arith.mulf %55, %1 : vector<1x32xf32>
    %cst_18 = arith.constant dense<0.000000e+00> : vector<1xf32>
    %57 = vector.multi_reduction <add>, %56, %cst_18 [1] : vector<1x32xf32> to vector<1xf32>
    %58 = vector.shape_cast %57 : vector<1xf32> to vector<1x1xf32>
    %59 = vector.extract_strided_slice %7 {offsets = [2, 0], sizes = [1, 128], strides = [1, 1]} : vector<8x128xf32> to vector<1x128xf32>
    %cst_19 = arith.constant dense<0.000000e+00> : vector<1x128xf32>
    %60 = tpu.matmul %53, %8, %cst_19 {dimension_numbers = #tpu.dot_dimension_numbers<[1], [0], [0], [1], [0, 0, 1, 1], [], []>} : vector<1x32xf32>, vector<32x128xf32>, vector<1x128xf32> -> vector<1x128xf32>
    %61 = arith.addf %59, %60 : vector<1x128xf32>
    %62 = vector.extract_strided_slice %61 {offsets = [0, 0], sizes = [1, 96], strides = [1, 1]} : vector<1x128xf32> to vector<1x96xf32>
    %63 = arith.negf %62 : vector<1x96xf32>
    %64 = math.exp %63 : vector<1x96xf32>
    %cst_20 = arith.constant 1.000000e+00 : f32
    %65 = vector.broadcast %cst_20 : f32 to vector<1x96xf32>
    %66 = arith.addf %65, %64 : vector<1x96xf32>
    %67 = arith.divf %65, %66 : vector<1x96xf32>
    %68 = vector.extract_strided_slice %61 {offsets = [0, 96], sizes = [1, 32], strides = [1, 1]} : vector<1x128xf32> to vector<1x32xf32>
    %69 = math.tanh %68 : vector<1x32xf32>
    %70 = vector.extract_strided_slice %67 {offsets = [0, 0], sizes = [1, 32], strides = [1, 1]} : vector<1x96xf32> to vector<1x32xf32>
    %71 = vector.extract_strided_slice %67 {offsets = [0, 32], sizes = [1, 32], strides = [1, 1]} : vector<1x96xf32> to vector<1x32xf32>
    %72 = vector.extract_strided_slice %67 {offsets = [0, 64], sizes = [1, 32], strides = [1, 1]} : vector<1x96xf32> to vector<1x32xf32>
    %73 = arith.mulf %71, %51 : vector<1x32xf32>
    %74 = arith.mulf %70, %69 : vector<1x32xf32>
    %75 = arith.addf %73, %74 : vector<1x32xf32>
    %76 = math.tanh %75 : vector<1x32xf32>
    %77 = arith.mulf %72, %76 : vector<1x32xf32>
    %cst_21 = arith.constant 0.000000e+00 : f32
    %78 = vector.broadcast %cst_21 : f32 to vector<1x32xf32>
    %79 = arith.maximumf %77, %78 : vector<1x32xf32>
    %80 = arith.mulf %79, %1 : vector<1x32xf32>
    %cst_22 = arith.constant dense<0.000000e+00> : vector<1xf32>
    %81 = vector.multi_reduction <add>, %80, %cst_22 [1] : vector<1x32xf32> to vector<1xf32>
    %82 = vector.shape_cast %81 : vector<1xf32> to vector<1x1xf32>
    %83 = vector.extract_strided_slice %7 {offsets = [3, 0], sizes = [1, 128], strides = [1, 1]} : vector<8x128xf32> to vector<1x128xf32>
    %cst_23 = arith.constant dense<0.000000e+00> : vector<1x128xf32>
    %84 = tpu.matmul %77, %8, %cst_23 {dimension_numbers = #tpu.dot_dimension_numbers<[1], [0], [0], [1], [0, 0, 1, 1], [], []>} : vector<1x32xf32>, vector<32x128xf32>, vector<1x128xf32> -> vector<1x128xf32>
    %85 = arith.addf %83, %84 : vector<1x128xf32>
    %86 = vector.extract_strided_slice %85 {offsets = [0, 0], sizes = [1, 96], strides = [1, 1]} : vector<1x128xf32> to vector<1x96xf32>
    %87 = arith.negf %86 : vector<1x96xf32>
    %88 = math.exp %87 : vector<1x96xf32>
    %cst_24 = arith.constant 1.000000e+00 : f32
    %89 = vector.broadcast %cst_24 : f32 to vector<1x96xf32>
    %90 = arith.addf %89, %88 : vector<1x96xf32>
    %91 = arith.divf %89, %90 : vector<1x96xf32>
    %92 = vector.extract_strided_slice %85 {offsets = [0, 96], sizes = [1, 32], strides = [1, 1]} : vector<1x128xf32> to vector<1x32xf32>
    %93 = math.tanh %92 : vector<1x32xf32>
    %94 = vector.extract_strided_slice %91 {offsets = [0, 0], sizes = [1, 32], strides = [1, 1]} : vector<1x96xf32> to vector<1x32xf32>
    %95 = vector.extract_strided_slice %91 {offsets = [0, 32], sizes = [1, 32], strides = [1, 1]} : vector<1x96xf32> to vector<1x32xf32>
    %96 = vector.extract_strided_slice %91 {offsets = [0, 64], sizes = [1, 32], strides = [1, 1]} : vector<1x96xf32> to vector<1x32xf32>
    %97 = arith.mulf %95, %75 : vector<1x32xf32>
    %98 = arith.mulf %94, %93 : vector<1x32xf32>
    %99 = arith.addf %97, %98 : vector<1x32xf32>
    %100 = math.tanh %99 : vector<1x32xf32>
    %101 = arith.mulf %96, %100 : vector<1x32xf32>
    %cst_25 = arith.constant 0.000000e+00 : f32
    %102 = vector.broadcast %cst_25 : f32 to vector<1x32xf32>
    %103 = arith.maximumf %101, %102 : vector<1x32xf32>
    %104 = arith.mulf %103, %1 : vector<1x32xf32>
    %cst_26 = arith.constant dense<0.000000e+00> : vector<1xf32>
    %105 = vector.multi_reduction <add>, %104, %cst_26 [1] : vector<1x32xf32> to vector<1xf32>
    %106 = vector.shape_cast %105 : vector<1xf32> to vector<1x1xf32>
    %107 = vector.extract_strided_slice %7 {offsets = [4, 0], sizes = [1, 128], strides = [1, 1]} : vector<8x128xf32> to vector<1x128xf32>
    %cst_27 = arith.constant dense<0.000000e+00> : vector<1x128xf32>
    %108 = tpu.matmul %101, %8, %cst_27 {dimension_numbers = #tpu.dot_dimension_numbers<[1], [0], [0], [1], [0, 0, 1, 1], [], []>} : vector<1x32xf32>, vector<32x128xf32>, vector<1x128xf32> -> vector<1x128xf32>
    %109 = arith.addf %107, %108 : vector<1x128xf32>
    %110 = vector.extract_strided_slice %109 {offsets = [0, 0], sizes = [1, 96], strides = [1, 1]} : vector<1x128xf32> to vector<1x96xf32>
    %111 = arith.negf %110 : vector<1x96xf32>
    %112 = math.exp %111 : vector<1x96xf32>
    %cst_28 = arith.constant 1.000000e+00 : f32
    %113 = vector.broadcast %cst_28 : f32 to vector<1x96xf32>
    %114 = arith.addf %113, %112 : vector<1x96xf32>
    %115 = arith.divf %113, %114 : vector<1x96xf32>
    %116 = vector.extract_strided_slice %109 {offsets = [0, 96], sizes = [1, 32], strides = [1, 1]} : vector<1x128xf32> to vector<1x32xf32>
    %117 = math.tanh %116 : vector<1x32xf32>
    %118 = vector.extract_strided_slice %115 {offsets = [0, 0], sizes = [1, 32], strides = [1, 1]} : vector<1x96xf32> to vector<1x32xf32>
    %119 = vector.extract_strided_slice %115 {offsets = [0, 32], sizes = [1, 32], strides = [1, 1]} : vector<1x96xf32> to vector<1x32xf32>
    %120 = vector.extract_strided_slice %115 {offsets = [0, 64], sizes = [1, 32], strides = [1, 1]} : vector<1x96xf32> to vector<1x32xf32>
    %121 = arith.mulf %119, %99 : vector<1x32xf32>
    %122 = arith.mulf %118, %117 : vector<1x32xf32>
    %123 = arith.addf %121, %122 : vector<1x32xf32>
    %124 = math.tanh %123 : vector<1x32xf32>
    %125 = arith.mulf %120, %124 : vector<1x32xf32>
    %cst_29 = arith.constant 0.000000e+00 : f32
    %126 = vector.broadcast %cst_29 : f32 to vector<1x32xf32>
    %127 = arith.maximumf %125, %126 : vector<1x32xf32>
    %128 = arith.mulf %127, %1 : vector<1x32xf32>
    %cst_30 = arith.constant dense<0.000000e+00> : vector<1xf32>
    %129 = vector.multi_reduction <add>, %128, %cst_30 [1] : vector<1x32xf32> to vector<1xf32>
    %130 = vector.shape_cast %129 : vector<1xf32> to vector<1x1xf32>
    %131 = vector.extract_strided_slice %7 {offsets = [5, 0], sizes = [1, 128], strides = [1, 1]} : vector<8x128xf32> to vector<1x128xf32>
    %cst_31 = arith.constant dense<0.000000e+00> : vector<1x128xf32>
    %132 = tpu.matmul %125, %8, %cst_31 {dimension_numbers = #tpu.dot_dimension_numbers<[1], [0], [0], [1], [0, 0, 1, 1], [], []>} : vector<1x32xf32>, vector<32x128xf32>, vector<1x128xf32> -> vector<1x128xf32>
    %133 = arith.addf %131, %132 : vector<1x128xf32>
    %134 = vector.extract_strided_slice %133 {offsets = [0, 0], sizes = [1, 96], strides = [1, 1]} : vector<1x128xf32> to vector<1x96xf32>
    %135 = arith.negf %134 : vector<1x96xf32>
    %136 = math.exp %135 : vector<1x96xf32>
    %cst_32 = arith.constant 1.000000e+00 : f32
    %137 = vector.broadcast %cst_32 : f32 to vector<1x96xf32>
    %138 = arith.addf %137, %136 : vector<1x96xf32>
    %139 = arith.divf %137, %138 : vector<1x96xf32>
    %140 = vector.extract_strided_slice %133 {offsets = [0, 96], sizes = [1, 32], strides = [1, 1]} : vector<1x128xf32> to vector<1x32xf32>
    %141 = math.tanh %140 : vector<1x32xf32>
    %142 = vector.extract_strided_slice %139 {offsets = [0, 0], sizes = [1, 32], strides = [1, 1]} : vector<1x96xf32> to vector<1x32xf32>
    %143 = vector.extract_strided_slice %139 {offsets = [0, 32], sizes = [1, 32], strides = [1, 1]} : vector<1x96xf32> to vector<1x32xf32>
    %144 = vector.extract_strided_slice %139 {offsets = [0, 64], sizes = [1, 32], strides = [1, 1]} : vector<1x96xf32> to vector<1x32xf32>
    %145 = arith.mulf %143, %123 : vector<1x32xf32>
    %146 = arith.mulf %142, %141 : vector<1x32xf32>
    %147 = arith.addf %145, %146 : vector<1x32xf32>
    %148 = math.tanh %147 : vector<1x32xf32>
    %149 = arith.mulf %144, %148 : vector<1x32xf32>
    %cst_33 = arith.constant 0.000000e+00 : f32
    %150 = vector.broadcast %cst_33 : f32 to vector<1x32xf32>
    %151 = arith.maximumf %149, %150 : vector<1x32xf32>
    %152 = arith.mulf %151, %1 : vector<1x32xf32>
    %cst_34 = arith.constant dense<0.000000e+00> : vector<1xf32>
    %153 = vector.multi_reduction <add>, %152, %cst_34 [1] : vector<1x32xf32> to vector<1xf32>
    %154 = vector.shape_cast %153 : vector<1xf32> to vector<1x1xf32>
    %155 = vector.extract_strided_slice %7 {offsets = [6, 0], sizes = [1, 128], strides = [1, 1]} : vector<8x128xf32> to vector<1x128xf32>
    %cst_35 = arith.constant dense<0.000000e+00> : vector<1x128xf32>
    %156 = tpu.matmul %149, %8, %cst_35 {dimension_numbers = #tpu.dot_dimension_numbers<[1], [0], [0], [1], [0, 0, 1, 1], [], []>} : vector<1x32xf32>, vector<32x128xf32>, vector<1x128xf32> -> vector<1x128xf32>
    %157 = arith.addf %155, %156 : vector<1x128xf32>
    %158 = vector.extract_strided_slice %157 {offsets = [0, 0], sizes = [1, 96], strides = [1, 1]} : vector<1x128xf32> to vector<1x96xf32>
    %159 = arith.negf %158 : vector<1x96xf32>
    %160 = math.exp %159 : vector<1x96xf32>
    %cst_36 = arith.constant 1.000000e+00 : f32
    %161 = vector.broadcast %cst_36 : f32 to vector<1x96xf32>
    %162 = arith.addf %161, %160 : vector<1x96xf32>
    %163 = arith.divf %161, %162 : vector<1x96xf32>
    %164 = vector.extract_strided_slice %157 {offsets = [0, 96], sizes = [1, 32], strides = [1, 1]} : vector<1x128xf32> to vector<1x32xf32>
    %165 = math.tanh %164 : vector<1x32xf32>
    %166 = vector.extract_strided_slice %163 {offsets = [0, 0], sizes = [1, 32], strides = [1, 1]} : vector<1x96xf32> to vector<1x32xf32>
    %167 = vector.extract_strided_slice %163 {offsets = [0, 32], sizes = [1, 32], strides = [1, 1]} : vector<1x96xf32> to vector<1x32xf32>
    %168 = vector.extract_strided_slice %163 {offsets = [0, 64], sizes = [1, 32], strides = [1, 1]} : vector<1x96xf32> to vector<1x32xf32>
    %169 = arith.mulf %167, %147 : vector<1x32xf32>
    %170 = arith.mulf %166, %165 : vector<1x32xf32>
    %171 = arith.addf %169, %170 : vector<1x32xf32>
    %172 = math.tanh %171 : vector<1x32xf32>
    %173 = arith.mulf %168, %172 : vector<1x32xf32>
    %cst_37 = arith.constant 0.000000e+00 : f32
    %174 = vector.broadcast %cst_37 : f32 to vector<1x32xf32>
    %175 = arith.maximumf %173, %174 : vector<1x32xf32>
    %176 = arith.mulf %175, %1 : vector<1x32xf32>
    %cst_38 = arith.constant dense<0.000000e+00> : vector<1xf32>
    %177 = vector.multi_reduction <add>, %176, %cst_38 [1] : vector<1x32xf32> to vector<1xf32>
    %178 = vector.shape_cast %177 : vector<1xf32> to vector<1x1xf32>
    %179 = vector.extract_strided_slice %7 {offsets = [7, 0], sizes = [1, 128], strides = [1, 1]} : vector<8x128xf32> to vector<1x128xf32>
    %cst_39 = arith.constant dense<0.000000e+00> : vector<1x128xf32>
    %180 = tpu.matmul %173, %8, %cst_39 {dimension_numbers = #tpu.dot_dimension_numbers<[1], [0], [0], [1], [0, 0, 1, 1], [], []>} : vector<1x32xf32>, vector<32x128xf32>, vector<1x128xf32> -> vector<1x128xf32>
    %181 = arith.addf %179, %180 : vector<1x128xf32>
    %182 = vector.extract_strided_slice %181 {offsets = [0, 0], sizes = [1, 96], strides = [1, 1]} : vector<1x128xf32> to vector<1x96xf32>
    %183 = arith.negf %182 : vector<1x96xf32>
    %184 = math.exp %183 : vector<1x96xf32>
    %cst_40 = arith.constant 1.000000e+00 : f32
    %185 = vector.broadcast %cst_40 : f32 to vector<1x96xf32>
    %186 = arith.addf %185, %184 : vector<1x96xf32>
    %187 = arith.divf %185, %186 : vector<1x96xf32>
    %188 = vector.extract_strided_slice %181 {offsets = [0, 96], sizes = [1, 32], strides = [1, 1]} : vector<1x128xf32> to vector<1x32xf32>
    %189 = math.tanh %188 : vector<1x32xf32>
    %190 = vector.extract_strided_slice %187 {offsets = [0, 0], sizes = [1, 32], strides = [1, 1]} : vector<1x96xf32> to vector<1x32xf32>
    %191 = vector.extract_strided_slice %187 {offsets = [0, 32], sizes = [1, 32], strides = [1, 1]} : vector<1x96xf32> to vector<1x32xf32>
    %192 = vector.extract_strided_slice %187 {offsets = [0, 64], sizes = [1, 32], strides = [1, 1]} : vector<1x96xf32> to vector<1x32xf32>
    %193 = arith.mulf %191, %171 : vector<1x32xf32>
    %194 = arith.mulf %190, %189 : vector<1x32xf32>
    %195 = arith.addf %193, %194 : vector<1x32xf32>
    %196 = math.tanh %195 : vector<1x32xf32>
    %197 = arith.mulf %192, %196 : vector<1x32xf32>
    %cst_41 = arith.constant 0.000000e+00 : f32
    %198 = vector.broadcast %cst_41 : f32 to vector<1x32xf32>
    %199 = arith.maximumf %197, %198 : vector<1x32xf32>
    %200 = arith.mulf %199, %1 : vector<1x32xf32>
    %cst_42 = arith.constant dense<0.000000e+00> : vector<1xf32>
    %201 = vector.multi_reduction <add>, %200, %cst_42 [1] : vector<1x32xf32> to vector<1xf32>
    %202 = vector.shape_cast %201 : vector<1xf32> to vector<1x1xf32>
    %203 = tpu.concatenate %34, %58, %82, %106, %130, %154, %178, %202 in 1 : vector<1x1xf32>, vector<1x1xf32>, vector<1x1xf32>, vector<1x1xf32>, vector<1x1xf32>, vector<1x1xf32>, vector<1x1xf32>, vector<1x1xf32> -> vector<1x8xf32>
    %204 = vector.broadcast %2 : vector<1x1xf32> to vector<1x8xf32>
    %205 = arith.addf %203, %204 : vector<1x8xf32>
    %c0_43 = arith.constant 0 : index
    %c0_44 = arith.constant 0 : index
    %206 = vector.load %arg4[%c0_43, %c0_44] : memref<1x8xf32, #tpu.memory_space<vmem>>, vector<1x8xf32>
    tpu.vector_store %arg4[%c0_43, %c0_44], %205 {strides = array<i32>} : memref<1x8xf32, #tpu.memory_space<vmem>>, vector<1x8xf32>,
    return
  }
}

</mosaic_0001>

<bundles_post_ra>
// kernel: tpu_custom_call.1
= control target key start
LH: loop header
LB: loop body
LE: loop exit
PB: predicated region body
PF: predicated region fallthrough
CT: control target
= control target key end

     0   :  { %9 = vsyncpa [#allocation3], 0  ;;  %s1222_s0 = inlined_call_operand.hbm [shape: f32[8,64], index: 0, kind: input, shape index: {}]   ;;  %s1223_s1 = inlined_call_operand.hbm [shape: f32[64,128], index: 1, kind: input, shape index: {}]   ;;  %s1224_s2 = inlined_call_operand.hbm [shape: f32[32,128], index: 2, kind: input, shape index: {}]   ;;  %s1225_s3 = inlined_call_operand.hbm [shape: f32[3,128], index: 3, kind: input, shape index: {}]   ;;  %s1226_s4 = inlined_call_operand.hbm [shape: f32[1,8], index: 4, kind: output, shape index: {}]  }
   0x1   :  { %10 = vsyncpa [#allocation6], 0 }
   0x2   :  { %11 = vsyncpa [#allocation9], 0  ;;  %s28_s17 = sshll.u32 %s1223_s1, 4  ;;  %s29_s17 = int_to_ptr.hbm [resolvable:$true] %s28_s17 }
   0x3   :  { %12 = vsyncpa [#allocation4], 0  ;;  %s1065_s18 = smov [#allocation5]   ;;  %s18_s22 = sshll.u32 %s1222_s0, 4  ;;  %s19_s22 = int_to_ptr.hbm [resolvable:$true] %s18_s22 }
   0x4   :  { %s30_s19 = sshll.u32 %s1065_s18, 4  ;;  %s1066_s23 = smov 128   ;;  %s31_s19 = int_to_ptr.vmem [resolvable:$true] %s30_s19 }
   0x5   :  { %s1067_s24 = smov 8   ;;  %s1068_s25 = smov [#allocation2]  }
   0x6   :  { %36 = dma.hbm_to_vmem [thread:$0]  %s29_s17, 1024, %s31_s19, [#allocation6], %s1066_s23, %s1066_s23, %s1067_s24  }
   0x7   :  { %s20_s26 = sshll.u32 %s1068_s25, 4  ;;  %s41_s29 = sshll.u32 %s1224_s2, 4  ;;  %s21_s26 = int_to_ptr.vmem [resolvable:$true] %s20_s26  ;;  %s42_s29 = int_to_ptr.hbm [resolvable:$true] %s41_s29 }
   0x8   :  { %23 = dma.hbm_to_vmem [thread:$0]  %s19_s22, 128, %s21_s26, [#allocation3]  }
   0x9   :  { %s55_s5 = sshll.u32 %s1225_s3, 4  ;;  %s1069_s6 = smov [#allocation7]   ;;  %s56_s5 = int_to_ptr.hbm [resolvable:$true] %s55_s5 }
   0xa   :  { %s43_s7 = sshll.u32 %s1069_s6, 4  ;;  %s1070_s0 = smov [#allocation8]   ;;  %s44_s7 = int_to_ptr.vmem [resolvable:$true] %s43_s7 }
   0xb   :  { %49 = dma.hbm_to_vmem [thread:$0]  %s42_s29, 512, %s44_s7, [#allocation6], %s1066_s23, %s1066_s23, %s1067_s24  }
   0xc   :  { %s57_s8 = sshll.u32 %s1070_s0, 4  ;;  %s58_s8 = int_to_ptr.vmem [resolvable:$true] %s57_s8 }
   0xd   :  { %60 = dma.hbm_to_vmem [thread:$0]  %s56_s5, 64, %s58_s8, [#allocation9]  }
   0xe   :  { %1057 = dma.done.wait [#allocation3], 128  }
   0xf   :  { %1058 = vsyncadd [#allocation3], 4294967168 }
  0x10   :  { %1059 = dma.done.wait [#allocation6], 1536  }
  0x11   :  { %1060 = vsyncadd [#allocation6], 4294965760 }
  0x12   :  { %1061 = dma.done.wait [#allocation9], 64  }
  0x13   :  { %1062 = vsyncadd [#allocation9], 4294967232  ;;  %v88_v0 = vld [vmem:[#allocation5 + $0x38] sm:$0xff]  ;;  %v87_v1 = vld [vmem:[#allocation5 + $0x30] sm:$0xff]  ;;  %v1071_v11 = vmov 0.0   ;;  %vm90_vm0 = vcmask 523264  }
  0x14   :  { %102 = vmatpush.msra.mxu0 %v88_v0  ;;  %v86_v2 = vld [vmem:[#allocation5 + $0x28] sm:$0xff]  ;;  %v117_v3 = vld [vmem:[#allocation7 + $0x18] sm:$0xff]  ;;  %v116_v4 = vld [vmem:[#allocation7 + $0x10] sm:$0xff]  ;;  %s1072_s2 = smov 32   ;;  %s1073_s3 = smov 64   ;;  %vm118_vm5 = vcmask 261120  }
  0x15   :  { %134 = vmatpush.msra.mxu1 %v117_v3  ;;  %v85_v5 = vld [vmem:[#allocation5 + $0x20] sm:$0xff]  ;;  %v115_v6 = vld [vmem:[#allocation7 + $0x8] sm:$0xff]  ;;  %211 = vmatpush.msra.mxu2 %v117_v3  ;;  %v84_v7 = vld [vmem:[#allocation5 + $0x18] sm:$0xff]  ;;  %s1075_s9 = smov [#allocation10]   ;;  %s831_s13 = sshll.u32 %s1226_s4, 4  ;;  %s832_s13 = int_to_ptr.hbm [resolvable:$true] %s831_s13 }
  0x16   :  { %103 = vmatpush.msra.mxu0 %v87_v1  ;;  %295 = vmatpush.msra.mxu3 %v117_v3  ;;  %v114_v8 = vld [vmem:[#allocation7] sm:$0xff]  ;;  %v83_v9 = vld [vmem:[#allocation5 + $0x10] sm:$0xff]  ;;  %v82_v10 = vld [vmem:[#allocation5 + $0x8] sm:$0xff]  ;;  %s829_s10 = sshll.u32 %s1075_s9, 4  ;;  %s830_s10 = int_to_ptr.vmem [resolvable:$true] %s829_s10 }
  0x17   :  { %135 = vmatpush.msra.mxu1 %v116_v4  ;;  %212 = vmatpush.msra.mxu2 %v116_v4  ;;  %v81_v12 = vld [vmem:[#allocation5] sm:$0xff]  ;;  %v80_v13 = vld [vmem:[#allocation2] sm:$0xff] }
  0x18   :  { %104 = vmatpush.msra.mxu0 %v86_v2  ;;  %296 = vmatpush.msra.mxu3 %v116_v4  ;;  %v872_v14 = vld [vmem:[#allocation8] ss:$0 sm:$0xff] }
  0x19   :  { %136 = vmatpush.msra.mxu1 %v115_v6  ;;  %213 = vmatpush.msra.mxu2 %v115_v6 }
  0x1a   :  { %105 = vmatpush.msra.mxu0 %v85_v5  ;;  %297 = vmatpush.msra.mxu3 %v115_v6 }
  0x1b   :  { %137 = vmatpush.msra.mxu1 %v114_v8  ;;  %214 = vmatpush.msra.mxu2 %v114_v8 }
  0x1c   :  { %106 = vmatpush.msra.mxu0 %v84_v7  ;;  %138 = vmatmul.f32.vlgmr.msra.gmra.mxu1 %v1071_v11 }
  0x1d   :  { %298 = vmatpush.msra.mxu3 %v114_v8  ;;  %379 = vmatpush.msrb.mxu1 %v117_v3 }
  0x1e   :  { %107 = vmatpush.msra.mxu0 %v83_v9  ;;  %463 = vmatpush.msrb.mxu2 %v117_v3 }
  0x1f   :  { %547 = vmatpush.msrb.mxu3 %v117_v3  ;;  %380 = vmatpush.msrb.mxu1 %v116_v4 }
  0x20   :  { %108 = vmatpush.msra.mxu0 %v82_v10  ;;  %464 = vmatpush.msrb.mxu2 %v116_v4 }
  0x21   :  { %548 = vmatpush.msrb.mxu3 %v116_v4  ;;  %381 = vmatpush.msrb.mxu1 %v115_v6 }
  0x22   :  { %109 = vmatpush.msra.mxu0 %v81_v12  ;;  %465 = vmatpush.msrb.mxu2 %v115_v6 }
  0x23   :  { %843 = vmatmul.msk.f32.vlgmr.msra.gmra.mxu0 %vm90_vm0, %v80_v13  ;;  %549 = vmatpush.msrb.mxu3 %v115_v6 }
  0x24   :  { %382 = vmatpush.msrb.mxu1 %v114_v8  ;;  %631 = vmatpush.msrb.mxu0 %v117_v3 }
  0x25   :  { %466 = vmatpush.msrb.mxu2 %v114_v8  ;;  %550 = vmatpush.msrb.mxu3 %v114_v8 }
  0x26   :  { %632 = vmatpush.msrb.mxu0 %v116_v4  ;;  %715 = vmatpush.msra.mxu1 %v117_v3 }
  0x28   :  { %633 = vmatpush.msrb.mxu0 %v115_v6  ;;  %716 = vmatpush.msra.mxu1 %v116_v4 }
  0x2a   :  { %634 = vmatpush.msrb.mxu0 %v114_v8  ;;  %717 = vmatpush.msra.mxu1 %v115_v6 }
  0x2c   :  { %718 = vmatpush.msra.mxu1 %v114_v8 }
  0x99   :  { %v139_v16 = vpop.f32.mrf.mxu1 }
  0xa0   :  { %v111_v15 = vpop.f32.mrf.mxu0 }
  0xa1   :  { %v1113_v17 = vadd.f32 %v872_v14, %v111_v15 }
  0xa3   :  { %v142_v18 = vadd.f32 %v139_v16, %v1113_v17 }
  0xa5   :  { %873 = vtanh.f32 %v142_v18  ;;  %v844_v20 = vmul.f32 -1.442695, %v142_v18 }
  0xa7   :  { %875 = vpow2.f32 %v844_v20 }
  0xab   :  { %v874_v19 = vpop.eup %873 }
  0xac   :  { %165 = vrot.lane.b32.xlu0 %v874_v19, %s1072_s2 }
  0xad   :  { %v876_v21 = vpop.eup %875 }
  0xae   :  { %v146_v22 = vadd.f32 1.0, %v876_v21 }
  0xb0   :  { %877 = vrcp.f32 %v146_v22  ;;  %v158_v28 = vand.u32 2147483648, %v146_v22  ;;  %vm152_vm2 = vweird.f32 %v146_v22  ;;  %v156_v29 = vand.u32 2147483647, %v146_v22 }
  0xb2   :  { %v159_v31 = vor.u32 1.1754944e-38, %v158_v28  ;;  %vm157_vm4 = vcmp.eq.f32.partialorder %v156_v29, 8.507059e+37 }
  0xb6   :  { %v878_v23 = vpop.eup %877 }
  0xb7   :  { %v148_v24 = vmul.f32 %v878_v23, %v146_v22  ;;  %vm153_vm1 = vweird.f32 %v878_v23 }
  0xb8   :  { %vm154_vm3 = vmor %vm152_vm2, %vm153_vm1 }
  0xb9   :  { %v149_v25 = vsub.f32 1.0, %v148_v24 }
  0xbb   :  { %v150_v26 = vmul.f32 %v878_v23, %v149_v25 }
  0xbd   :  { %v151_v27 = vadd.f32 %v878_v23, %v150_v26 }
  0xbf   :  { %v155_v30 = vsel %vm154_vm3, %v878_v23, %v151_v27 }
  0xc0   :  { %v160_v33 = vsel %vm157_vm4, %v159_v31, %v155_v30 }
  0xc1   :  { %v163_v35 = vmul.f32 0.0, %v160_v33 }
 0x11e   :  { %v166_v32 = vpop.permute.xlu0 %165 }
 0x11f   :  { %v168_v34 = vmul.f32 %v166_v32, %v160_v33 }
 0x121   :  { %170 = vrot.lane.b32.xlu0 %v168_v34, %s1072_s2 }
 0x193   :  { %v171_v36 = vpop.permute.xlu0 %170 }
 0x194   :  { %v173_v37 = vadd.f32 %v171_v36, %v163_v35 }
 0x196   :  { %879 = vtanh.f32 %v173_v37  ;;  %v244_v61 = vrot.slane %v173_v37, 7 }
 0x19c   :  { %v880_v38 = vpop.eup %879 }
 0x19d   :  { %176 = vrot.lane.b32.xlu1 %v880_v38, %s1072_s2 }
 0x20f   :  { %v177_v39 = vpop.permute.xlu1 %176 }
 0x210   :  { %v1119_v40 = vmul.f32 %v177_v39, %v160_v33 }
 0x212   :  { %195 = vrot.lane.b32.xlu1 %v1119_v40, %s1073_s3 }
 0x284   :  { %v196_v41 = vpop.permute.xlu1 %195 }
 0x285   :  { %845 = vmatmul.msk.f32.vlgmr.msra.gmra.mxu2 %vm118_vm5, %v196_v41 }
 0x308   :  { %v216_v42 = vpop.f32.mrf.mxu2 }
 0x309   :  { %v220_v43 = vrot.slane %v216_v42, 7 }
 0x30b   :  { %v222_v44 = vadd.f32 %v220_v43, %v1113_v17 }
 0x30d   :  { %881 = vtanh.f32 %v222_v44  ;;  %v846_v46 = vmul.f32 -1.442695, %v222_v44 }
 0x30f   :  { %883 = vpow2.f32 %v846_v46 }
 0x313   :  { %v882_v45 = vpop.eup %881 }
 0x314   :  { %248 = vrot.lane.b32.xlu2 %v882_v45, %s1072_s2 }
 0x315   :  { %v884_v47 = vpop.eup %883 }
 0x316   :  { %v226_v48 = vadd.f32 1.0, %v884_v47 }
 0x318   :  { %885 = vrcp.f32 %v226_v48  ;;  %v238_v54 = vand.u32 2147483648, %v226_v48  ;;  %vm232_vm7 = vweird.f32 %v226_v48  ;;  %v236_v55 = vand.u32 2147483647, %v226_v48 }
 0x31a   :  { %v239_v57 = vor.u32 1.1754944e-38, %v238_v54  ;;  %vm237_vm9 = vcmp.eq.f32.partialorder %v236_v55, 8.507059e+37 }
 0x31e   :  { %v886_v49 = vpop.eup %885 }
 0x31f   :  { %v228_v50 = vmul.f32 %v886_v49, %v226_v48  ;;  %vm233_vm6 = vweird.f32 %v886_v49 }
 0x320   :  { %vm234_vm8 = vmor %vm232_vm7, %vm233_vm6 }
 0x321   :  { %v229_v51 = vsub.f32 1.0, %v228_v50 }
 0x323   :  { %v230_v52 = vmul.f32 %v886_v49, %v229_v51 }
 0x325   :  { %v231_v53 = vadd.f32 %v886_v49, %v230_v52 }
 0x327   :  { %v235_v56 = vsel %vm234_vm8, %v886_v49, %v231_v53 }
 0x328   :  { %v240_v59 = vsel %vm237_vm9, %v239_v57, %v235_v56 }
 0x329   :  { %v246_v62 = vmul.f32 %v244_v61, %v240_v59 }
 0x36e   :  { %v249_v58 = vpop.permute.xlu2 %248 }
 0x36f   :  { %v251_v60 = vmul.f32 %v249_v58, %v240_v59 }
 0x371   :  { %253 = vrot.lane.b32.xlu2 %v251_v60, %s1072_s2 }
 0x3cb   :  { %v254_v63 = vpop.permute.xlu2 %253 }
 0x3cc   :  { %v256_v0 = vadd.f32 %v254_v63, %v246_v62 }
 0x3ce   :  { %887 = vtanh.f32 %v256_v0  ;;  %v328_v26 = vrot.slane %v256_v0, 7 }
 0x3d4   :  { %v888_v1 = vpop.eup %887 }
 0x3d5   :  { %259 = vrot.lane.b32.xlu0 %v888_v1, %s1072_s2 }
 0x447   :  { %v260_v2 = vpop.permute.xlu0 %259 }
 0x448   :  { %v1128_v3 = vmul.f32 %v260_v2, %v240_v59 }
 0x44a   :  { %v278_v4 = vrot.slane %v1128_v3, 1 }
 0x44c   :  { %279 = vrot.lane.b32.xlu1 %v278_v4, %s1073_s3 }
 0x4be   :  { %v280_v5 = vpop.permute.xlu1 %279 }
 0x4bf   :  { %847 = vmatmul.msk.f32.vlgmr.msra.gmra.mxu3 %vm118_vm5, %v280_v5 }
 0x542   :  { %v300_v6 = vpop.f32.mrf.mxu3 }
 0x543   :  { %v304_v7 = vrot.slane %v300_v6, 6 }
 0x545   :  { %v306_v8 = vadd.f32 %v304_v7, %v1113_v17 }
 0x547   :  { %889 = vtanh.f32 %v306_v8  ;;  %v848_v10 = vmul.f32 -1.442695, %v306_v8 }
 0x549   :  { %891 = vpow2.f32 %v848_v10 }
 0x54d   :  { %v890_v9 = vpop.eup %889 }
 0x54e   :  { %332 = vrot.lane.b32.xlu2 %v890_v9, %s1072_s2 }
 0x54f   :  { %v892_v11 = vpop.eup %891 }
 0x550   :  { %v310_v12 = vadd.f32 1.0, %v892_v11 }
 0x552   :  { %893 = vrcp.f32 %v310_v12  ;;  %v322_v19 = vand.u32 2147483648, %v310_v12  ;;  %vm316_vm11 = vweird.f32 %v310_v12  ;;  %v320_v20 = vand.u32 2147483647, %v310_v12 }
 0x554   :  { %v323_v22 = vor.u32 1.1754944e-38, %v322_v19  ;;  %vm321_vm13 = vcmp.eq.f32.partialorder %v320_v20, 8.507059e+37 }
 0x558   :  { %v894_v13 = vpop.eup %893 }
 0x559   :  { %v312_v14 = vmul.f32 %v894_v13, %v310_v12  ;;  %vm317_vm10 = vweird.f32 %v894_v13 }
 0x55a   :  { %vm318_vm12 = vmor %vm316_vm11, %vm317_vm10 }
 0x55b   :  { %v313_v15 = vsub.f32 1.0, %v312_v14 }
 0x55d   :  { %v314_v16 = vmul.f32 %v894_v13, %v313_v15 }
 0x55f   :  { %v315_v18 = vadd.f32 %v894_v13, %v314_v16 }
 0x561   :  { %v319_v21 = vsel %vm318_vm12, %v894_v13, %v315_v18 }
 0x562   :  { %v324_v24 = vsel %vm321_vm13, %v323_v22, %v319_v21 }
 0x563   :  { %v330_v27 = vmul.f32 %v328_v26, %v324_v24 }
 0x5a8   :  { %v333_v23 = vpop.permute.xlu2 %332 }
 0x5a9   :  { %v335_v25 = vmul.f32 %v333_v23, %v324_v24 }
 0x5ab   :  { %337 = vrot.lane.b32.xlu0 %v335_v25, %s1072_s2 }
 0x61d   :  { %v338_v28 = vpop.permute.xlu0 %337 }
 0x61e   :  { %v340_v29 = vadd.f32 %v338_v28, %v330_v27 }
 0x620   :  { %895 = vtanh.f32 %v340_v29  ;;  %v412_v55 = vrot.slane %v340_v29, 7 }
 0x626   :  { %v896_v30 = vpop.eup %895 }
 0x627   :  { %343 = vrot.lane.b32.xlu1 %v896_v30, %s1072_s2 }
 0x699   :  { %v344_v31 = vpop.permute.xlu1 %343 }
 0x69a   :  { %v1137_v32 = vmul.f32 %v344_v31, %v324_v24 }
 0x69c   :  { %v362_v33 = vrot.slane %v1137_v32, 2 }
 0x69e   :  { %363 = vrot.lane.b32.xlu2 %v362_v33, %s1073_s3 }
 0x6f8   :  { %v364_v34 = vpop.permute.xlu2 %363 }
 0x6f9   :  { %849 = vmatmul.msk.f32.vlgmr.msrb.gmra.mxu1 %vm118_vm5, %v364_v34 }
 0x776   :  { %v384_v35 = vpop.f32.mrf.mxu1 }
 0x777   :  { %v388_v36 = vrot.slane %v384_v35, 5 }
 0x779   :  { %v390_v37 = vadd.f32 %v388_v36, %v1113_v17 }
 0x77b   :  { %897 = vtanh.f32 %v390_v37  ;;  %v850_v39 = vmul.f32 -1.442695, %v390_v37 }
 0x77d   :  { %899 = vpow2.f32 %v850_v39 }
 0x781   :  { %v898_v38 = vpop.eup %897 }
 0x782   :  { %416 = vrot.lane.b32.xlu0 %v898_v38, %s1072_s2 }
 0x783   :  { %v900_v41 = vpop.eup %899 }
 0x784   :  { %v394_v42 = vadd.f32 1.0, %v900_v41 }
 0x786   :  { %901 = vrcp.f32 %v394_v42  ;;  %v406_v48 = vand.u32 2147483648, %v394_v42  ;;  %vm400_vm15 = vweird.f32 %v394_v42  ;;  %v404_v49 = vand.u32 2147483647, %v394_v42 }
 0x788   :  { %v407_v51 = vor.u32 1.1754944e-38, %v406_v48  ;;  %vm405_vm1 = vcmp.eq.f32.partialorder %v404_v49, 8.507059e+37 }
 0x78c   :  { %v902_v43 = vpop.eup %901 }
 0x78d   :  { %v396_v44 = vmul.f32 %v902_v43, %v394_v42  ;;  %vm401_vm14 = vweird.f32 %v902_v43 }
 0x78e   :  { %vm402_vm0 = vmor %vm400_vm15, %vm401_vm14  ;;  %vm273_vm15 = vcmask 254977  }
 0x78f   :  { %v397_v45 = vsub.f32 1.0, %v396_v44 }
 0x791   :  { %v398_v46 = vmul.f32 %v902_v43, %v397_v45 }
 0x793   :  { %v399_v47 = vadd.f32 %v902_v43, %v398_v46 }
 0x795   :  { %v403_v50 = vsel %vm402_vm0, %v902_v43, %v399_v47  ;;  %vm190_vm0 = vcmask 253952  }
 0x796   :  { %v408_v53 = vsel %vm405_vm1, %v407_v51, %v403_v50 }
 0x797   :  { %v414_v56 = vmul.f32 %v412_v55, %v408_v53 }
 0x7f4   :  { %v417_v52 = vpop.permute.xlu0 %416 }
 0x7f5   :  { %v419_v54 = vmul.f32 %v417_v52, %v408_v53 }
 0x7f7   :  { %421 = vrot.lane.b32.xlu1 %v419_v54, %s1072_s2 }
 0x869   :  { %v422_v57 = vpop.permute.xlu1 %421 }
 0x86a   :  { %v424_v58 = vadd.f32 %v422_v57, %v414_v56 }
 0x86c   :  { %903 = vtanh.f32 %v424_v58  ;;  %v496_v21 = vrot.slane %v424_v58, 7 }
 0x872   :  { %v904_v59 = vpop.eup %903 }
 0x873   :  { %427 = vrot.lane.b32.xlu2 %v904_v59, %s1072_s2 }
 0x8cd   :  { %v428_v60 = vpop.permute.xlu2 %427 }
 0x8ce   :  { %v1146_v61 = vmul.f32 %v428_v60, %v408_v53 }
 0x8d0   :  { %v446_v62 = vrot.slane %v1146_v61, 3 }
 0x8d2   :  { %447 = vrot.lane.b32.xlu0 %v446_v62, %s1073_s3 }
 0x944   :  { %v448_v63 = vpop.permute.xlu0 %447 }
 0x945   :  { %851 = vmatmul.msk.f32.vlgmr.msrb.gmra.mxu2 %vm118_vm5, %v448_v63 }
 0x9c8   :  { %v468_v0 = vpop.f32.mrf.mxu2 }
 0x9c9   :  { %v472_v1 = vrot.slane %v468_v0, 4 }
 0x9cb   :  { %v474_v2 = vadd.f32 %v472_v1, %v1113_v17 }
 0x9cd   :  { %905 = vtanh.f32 %v474_v2  ;;  %v852_v5 = vmul.f32 -1.442695, %v474_v2 }
 0x9cf   :  { %907 = vpow2.f32 %v852_v5 }
 0x9d3   :  { %v906_v4 = vpop.eup %905 }
 0x9d4   :  { %500 = vrot.lane.b32.xlu1 %v906_v4, %s1072_s2 }
 0x9d5   :  { %v908_v6 = vpop.eup %907 }
 0x9d6   :  { %v478_v7 = vadd.f32 1.0, %v908_v6 }
 0x9d8   :  { %909 = vrcp.f32 %v478_v7  ;;  %v490_v13 = vand.u32 2147483648, %v478_v7  ;;  %vm484_vm3 = vweird.f32 %v478_v7  ;;  %v488_v14 = vand.u32 2147483647, %v478_v7 }
 0x9da   :  { %v491_v16 = vor.u32 1.1754944e-38, %v490_v13  ;;  %vm489_vm6 = vcmp.eq.f32.partialorder %v488_v14, 8.507059e+37 }
 0x9de   :  { %v910_v8 = vpop.eup %909 }
 0x9df   :  { %v480_v9 = vmul.f32 %v910_v8, %v478_v7  ;;  %vm485_vm2 = vweird.f32 %v910_v8 }
 0x9e0   :  { %vm486_vm4 = vmor %vm484_vm3, %vm485_vm2 }
 0x9e1   :  { %v481_v10 = vsub.f32 1.0, %v480_v9 }
 0x9e3   :  { %v482_v11 = vmul.f32 %v910_v8, %v481_v10 }
 0x9e5   :  { %v483_v12 = vadd.f32 %v910_v8, %v482_v11 }
 0x9e7   :  { %v487_v15 = vsel %vm486_vm4, %v910_v8, %v483_v12  ;;  %vm357_vm4 = vcmask 256002  }
 0x9e8   :  { %v492_v19 = vsel %vm489_vm6, %v491_v16, %v487_v15  ;;  %vm802_vm6 = vcmask 7168  }
 0x9e9   :  { %v498_v22 = vmul.f32 %v496_v21, %v492_v19 }
 0xa46   :  { %v501_v18 = vpop.permute.xlu1 %500 }
 0xa47   :  { %v503_v20 = vmul.f32 %v501_v18, %v492_v19 }
 0xa49   :  { %505 = vrot.lane.b32.xlu2 %v503_v20, %s1072_s2 }
 0xaa3   :  { %v506_v23 = vpop.permute.xlu2 %505 }
 0xaa4   :  { %v508_v24 = vadd.f32 %v506_v23, %v498_v22  ;;  %v1176_v23 = vld [vmem:[#allocation8 + $0x1] sm:$0x1] }
 0xaa6   :  { %911 = vtanh.f32 %v508_v24  ;;  %v580_v51 = vrot.slane %v508_v24, 7  ;;  %v264_v24 = vrot.slane %v1176_v23, 7 }
 0xaac   :  { %v912_v25 = vpop.eup %911 }
 0xaad   :  { %511 = vrot.lane.b32.xlu0 %v912_v25, %s1072_s2  ;;  %v348_v25 = vrot.slane %v1176_v23, 6 }
 0xb1f   :  { %v512_v26 = vpop.permute.xlu0 %511 }
 0xb20   :  { %v1155_v27 = vmul.f32 %v512_v26, %v492_v19 }
 0xb22   :  { %v530_v28 = vrot.slane %v1155_v27, 4 }
 0xb24   :  { %531 = vrot.lane.b32.xlu1 %v530_v28, %s1073_s3 }
 0xb96   :  { %v532_v29 = vpop.permute.xlu1 %531 }
 0xb97   :  { %853 = vmatmul.msk.f32.vlgmr.msrb.gmra.mxu3 %vm118_vm5, %v532_v29 }
 0xc1a   :  { %v552_v30 = vpop.f32.mrf.mxu3 }
 0xc1b   :  { %v556_v31 = vrot.slane %v552_v30, 3 }
 0xc1d   :  { %v558_v33 = vadd.f32 %v556_v31, %v1113_v17  ;;  %v180_v31 = vmax.f32 %v1119_v40, 0.0 }
 0xc1f   :  { %913 = vtanh.f32 %v558_v33  ;;  %v854_v35 = vmul.f32 -1.442695, %v558_v33 }
 0xc21   :  { %915 = vpow2.f32 %v854_v35  ;;  %v263_v35 = vmax.f32 %v1128_v3, 0.0 }
 0xc25   :  { %v914_v34 = vpop.eup %913 }
 0xc26   :  { %584 = vrot.lane.b32.xlu2 %v914_v34, %s1072_s2 }
 0xc27   :  { %v916_v36 = vpop.eup %915 }
 0xc28   :  { %v562_v37 = vadd.f32 1.0, %v916_v36 }
 0xc2a   :  { %917 = vrcp.f32 %v562_v37  ;;  %v574_v44 = vand.u32 2147483648, %v562_v37  ;;  %vm568_vm8 = vweird.f32 %v562_v37  ;;  %v572_v45 = vand.u32 2147483647, %v562_v37 }
 0xc2c   :  { %v575_v47 = vor.u32 1.1754944e-38, %v574_v44  ;;  %vm573_vm10 = vcmp.eq.f32.partialorder %v572_v45, 8.507059e+37 }
 0xc30   :  { %v918_v38 = vpop.eup %917 }
 0xc31   :  { %v564_v39 = vmul.f32 %v918_v38, %v562_v37  ;;  %vm569_vm7 = vweird.f32 %v918_v38  ;;  %v347_v37 = vmax.f32 %v1137_v32, 0.0 }
 0xc32   :  { %vm570_vm9 = vmor %vm568_vm8, %vm569_vm7  ;;  %vm804_vm7 = vcmask 15360   ;;  %vm441_vm8 = vcmask 257027  }
 0xc33   :  { %v565_v41 = vsub.f32 1.0, %v564_v39 }
 0xc35   :  { %v566_v42 = vmul.f32 %v918_v38, %v565_v41 }
 0xc37   :  { %v567_v43 = vadd.f32 %v918_v38, %v566_v42 }
 0xc39   :  { %v571_v46 = vsel %vm570_vm9, %v918_v38, %v567_v43  ;;  %vm525_vm9 = vcmask 258052  }
 0xc3a   :  { %v576_v49 = vsel %vm573_vm10, %v575_v47, %v571_v46  ;;  %v432_v47 = vrot.slane %v1176_v23, 5  ;;  %vm609_vm10 = vcmask 259077  }
 0xc3b   :  { %v582_v52 = vmul.f32 %v580_v51, %v576_v49 }
 0xc80   :  { %v585_v48 = vpop.permute.xlu2 %584 }
 0xc81   :  { %v587_v50 = vmul.f32 %v585_v48, %v576_v49 }
 0xc83   :  { %589 = vrot.lane.b32.xlu0 %v587_v50, %s1072_s2 }
 0xcf5   :  { %v590_v53 = vpop.permute.xlu0 %589 }
 0xcf6   :  { %v592_v54 = vadd.f32 %v590_v53, %v582_v52 }
 0xcf8   :  { %919 = vtanh.f32 %v592_v54  ;;  %v664_v18 = vrot.slane %v592_v54, 7 }
 0xcfe   :  { %v920_v55 = vpop.eup %919 }
 0xcff   :  { %595 = vrot.lane.b32.xlu1 %v920_v55, %s1072_s2 }
 0xd71   :  { %v596_v56 = vpop.permute.xlu1 %595 }
 0xd72   :  { %v1164_v57 = vmul.f32 %v596_v56, %v576_v49  ;;  %v516_v49 = vrot.slane %v1176_v23, 4 }
 0xd74   :  { %v614_v58 = vrot.slane %v1164_v57, 5 }
 0xd76   :  { %615 = vrot.lane.b32.xlu2 %v614_v58, %s1073_s3 }
 0xdd0   :  { %v616_v59 = vpop.permute.xlu2 %615 }
 0xdd1   :  { %855 = vmatmul.msk.f32.vlgmr.msrb.gmra.mxu0 %vm118_vm5, %v616_v59 }
 0xe4e   :  { %v636_v60 = vpop.f32.mrf.mxu0 }
 0xe4f   :  { %v640_v62 = vrot.slane %v636_v60, 2 }
 0xe51   :  { %v642_v63 = vadd.f32 %v640_v62, %v1113_v17 }
 0xe53   :  { %921 = vtanh.f32 %v642_v63  ;;  %v856_v1 = vmul.f32 -1.442695, %v642_v63 }
 0xe55   :  { %923 = vpow2.f32 %v856_v1 }
 0xe59   :  { %v922_v0 = vpop.eup %921 }
 0xe5a   :  { %668 = vrot.lane.b32.xlu0 %v922_v0, %s1072_s2 }
 0xe5b   :  { %v924_v2 = vpop.eup %923 }
 0xe5c   :  { %v646_v4 = vadd.f32 1.0, %v924_v2 }
 0xe5e   :  { %925 = vrcp.f32 %v646_v4  ;;  %v658_v10 = vand.u32 2147483648, %v646_v4  ;;  %vm652_vm12 = vweird.f32 %v646_v4  ;;  %v656_v11 = vand.u32 2147483647, %v646_v4 }
 0xe60   :  { %v659_v13 = vor.u32 1.1754944e-38, %v658_v10  ;;  %vm657_vm14 = vcmp.eq.f32.partialorder %v656_v11, 8.507059e+37  ;;  %v515_v10 = vmax.f32 %v1155_v27, 0.0 }
 0xe64   :  { %v926_v5 = vpop.eup %925 }
 0xe65   :  { %v648_v6 = vmul.f32 %v926_v5, %v646_v4  ;;  %vm653_vm11 = vweird.f32 %v926_v5 }
 0xe66   :  { %vm654_vm13 = vmor %vm652_vm12, %vm653_vm11  ;;  %vm693_vm11 = vcmask 260102   ;;  %vm777_vm12 = vcmask 261127  }
 0xe67   :  { %v649_v7 = vsub.f32 1.0, %v648_v6  ;;  %v600_v6 = vrot.slane %v1176_v23, 3 }
 0xe69   :  { %v650_v8 = vmul.f32 %v926_v5, %v649_v7  ;;  %v431_v7 = vmax.f32 %v1146_v61, 0.0  ;;  %v768_v61 = vrot.slane %v1176_v23, 1 }
 0xe6b   :  { %v651_v9 = vadd.f32 %v926_v5, %v650_v8 }
 0xe6d   :  { %v655_v12 = vsel %vm654_vm13, %v926_v5, %v651_v9  ;;  %vm806_vm13 = vcmask 23552  }
 0xe6e   :  { %v660_v15 = vsel %vm657_vm14, %v659_v13, %v655_v12  ;;  %vm808_vm14 = vcmask 31744  }
 0xe6f   :  { %v666_v19 = vmul.f32 %v664_v18, %v660_v15 }
 0xecc   :  { %v669_v14 = vpop.permute.xlu0 %668 }
 0xecd   :  { %v671_v16 = vmul.f32 %v669_v14, %v660_v15 }
 0xecf   :  { %673 = vrot.lane.b32.xlu1 %v671_v16, %s1072_s2 }
 0xf41   :  { %v674_v20 = vpop.permute.xlu1 %673 }
 0xf42   :  { %v1172_v21 = vadd.f32 %v674_v20, %v666_v19 }
 0xf44   :  { %927 = vtanh.f32 %v1172_v21  ;;  %v748_v13 = vrot.slane %v1172_v21, 7  ;;  %v599_v21 = vmax.f32 %v1164_v57, 0.0 }
 0xf4a   :  { %v928_v22 = vpop.eup %927 }
 0xf4b   :  { %679 = vrot.lane.b32.xlu2 %v928_v22, %s1072_s2 }
 0xf53   :  { %182 = vrot.lane.b32.xlu2 %v1176_v23, %s1073_s3 }
 0xf5b   :  { %265 = vrot.lane.b32.xlu2 %v264_v24, %s1073_s3 }
 0xf63   :  { %349 = vrot.lane.b32.xlu2 %v348_v25, %s1073_s3 }
 0xfa5   :  { %v680_v26 = vpop.permute.xlu2 %679 }
 0xfa6   :  { %v1184_v28 = vmul.f32 %v680_v26, %v660_v15 }
 0xfa8   :  { %v698_v29 = vrot.slane %v1184_v28, 6 }
 0xfaa   :  { %699 = vrot.lane.b32.xlu0 %v698_v29, %s1073_s3 }
 0xfad   :  { %v183_v30 = vpop.permute.xlu2 %182 }
 0xfae   :  { %v185_v33 = vmul.f32 %v183_v30, %v180_v31  ;;  %v683_v31 = vmax.f32 %v1184_v28, 0.0 }
 0xfb2   :  { %187 = vrot.lane.b32.xlu0 %v185_v33, %s1073_s3 }
 0xfb5   :  { %v266_v34 = vpop.permute.xlu2 %265 }
 0xfb6   :  { %v268_v36 = vmul.f32 %v266_v34, %v263_v35 }
 0xfba   :  { %270 = vrot.lane.b32.xlu0 %v268_v36, %s1073_s3 }
 0xfbd   :  { %v350_v38 = vpop.permute.xlu2 %349 }
 0xfbe   :  { %v352_v39 = vmul.f32 %v350_v38, %v347_v37 }
 0xfc0   :  { %354 = vrot.lane.b32.xlu2 %v352_v39, %s1073_s3 }
0x101a   :  { %v355_v2 = vpop.permute.xlu2 %354 }
0x101b   :  { %v358_v4 = vsel %vm357_vm4, %v355_v2, 0.0 }
0x101c   :  { %v700_v41 = vpop.permute.xlu0 %699 }
0x101d   :  { %857 = vmatmul.msk.f32.vlgmr.msra.gmra.mxu1 %vm118_vm5, %v700_v41 }
0x1024   :  { %v188_v42 = vpop.permute.xlu0 %187 }
0x1025   :  { %v191_v32 = vsel %vm190_vm0, %v188_v42, 0.0  ;;  %vm812_vm0 = vcmask 48128  }
0x102c   :  { %v271_v40 = vpop.permute.xlu0 %270 }
0x102d   :  { %v274_v43 = vsel %vm273_vm15, %v271_v40, 0.0  ;;  %vm810_vm15 = vcmask 39936  }
0x102e   :  { %275 = vadd.xlane.f32.xlu0 %v274_v43 }
0x109a   :  { %v720_v44 = vpop.f32.mrf.mxu1 }
0x109b   :  { %v724_v45 = vrot.slane %v720_v44, 1  ;;  %v79_v44 = vld [vmem:[#allocation8 + $0x2] sm:$0x1] }
0x109d   :  { %v726_v3 = vadd.f32 %v724_v45, %v1113_v17  ;;  %v684_v17 = vrot.slane %v1176_v23, 2  ;;  %v1074_v45 = vmov 0  }
0x109e   :  { %870 = vset.pattern.permute.xlu2 %v1074_v45  ;;  %871 = vset.pattern.permute.xlu0 %v1074_v45 }
0x109f   :  { %929 = vtanh.f32 %v726_v3  ;;  %v858_v48 = vmul.f32 -1.442695, %v726_v3 }
0x10a1   :  { %931 = vpow2.f32 %v858_v48  ;;  %v276_v19 = vpop.xlane.xlu0 %275 }
0x10a2   :  { %v782_v27 = vrot.slane %v276_v19, 1 }
0x10a5   :  { %v930_v46 = vpop.eup %929 }
0x10a6   :  { %752 = vrot.lane.b32.xlu1 %v930_v46, %s1072_s2 }
0x10a7   :  { %v932_v50 = vpop.eup %931 }
0x10a8   :  { %v730_v51 = vadd.f32 1.0, %v932_v50 }
0x10aa   :  { %933 = vrcp.f32 %v730_v51  ;;  %v742_v58 = vand.u32 2147483648, %v730_v51  ;;  %vm736_vm1 = vweird.f32 %v730_v51  ;;  %v740_v59 = vand.u32 2147483647, %v730_v51 }
0x10ac   :  { %v743_v62 = vor.u32 1.1754944e-38, %v742_v58  ;;  %vm741_vm3 = vcmp.eq.f32.partialorder %v740_v59, 8.507059e+37 }
0x10b0   :  { %v934_v52 = vpop.eup %933 }
0x10b1   :  { %v732_v53 = vmul.f32 %v934_v52, %v730_v51  ;;  %vm737_vm5 = vweird.f32 %v934_v52 }
0x10b2   :  { %vm738_vm2 = vmor %vm736_vm1, %vm737_vm5  ;;  %vm814_vm5 = vcmask 56320   ;;  %vm822_vm1 = vcmask 57344  }
0x10b3   :  { %v733_v54 = vsub.f32 1.0, %v732_v53 }
0x10b5   :  { %v734_v55 = vmul.f32 %v934_v52, %v733_v54 }
0x10b7   :  { %v735_v56 = vadd.f32 %v934_v52, %v734_v55 }
0x10b9   :  { %v739_v60 = vsel %vm738_vm2, %v934_v52, %v735_v56 }
0x10ba   :  { %v744_v0 = vsel %vm741_vm3, %v743_v62, %v739_v60 }
0x10bb   :  { %v750_v14 = vmul.f32 %v748_v13, %v744_v0 }
0x10d0   :  { %192 = vadd.xlane.f32.xlu1 %v191_v32 }
0x10e9   :  { %433 = vrot.lane.b32.xlu1 %v432_v47, %s1073_s3 }
0x10f1   :  { %517 = vrot.lane.b32.xlu1 %v516_v49, %s1073_s3 }
0x10f9   :  { %685 = vrot.lane.b32.xlu1 %v684_v17, %s1073_s3 }
0x1118   :  { %v753_v63 = vpop.permute.xlu1 %752 }
0x1119   :  { %v755_v1 = vmul.f32 %v753_v63, %v744_v0 }
0x111b   :  { %757 = vrot.lane.b32.xlu2 %v755_v1, %s1072_s2 }
0x1143   :  { %v193_v5 = vpop.xlane.xlu1 %192 }
0x1144   :  { %359 = vadd.xlane.f32.xlu2 %v358_v4  ;;  %v803_v24 = vsel %vm802_vm6, %v193_v5, %v782_v27 }
0x115b   :  { %v434_v8 = vpop.permute.xlu1 %433 }
0x115c   :  { %v436_v9 = vmul.f32 %v434_v8, %v431_v7  ;;  %601 = vrot.lane.b32.xlu2 %v600_v6, %s1073_s3 }
0x115e   :  { %438 = vrot.lane.b32.xlu1 %v436_v9, %s1073_s3 }
0x1163   :  { %v518_v11 = vpop.permute.xlu1 %517 }
0x1164   :  { %v520_v12 = vmul.f32 %v518_v11, %v515_v10 }
0x1166   :  { %522 = vrot.lane.b32.xlu1 %v520_v12, %s1073_s3 }
0x116b   :  { %v686_v30 = vpop.permute.xlu1 %685 }
0x116c   :  { %v688_v23 = vmul.f32 %v686_v30, %v683_v31 }
0x1175   :  { %v758_v15 = vpop.permute.xlu2 %757 }
0x1176   :  { %v760_v16 = vadd.f32 %v758_v15, %v750_v14 }
0x1178   :  { %935 = vtanh.f32 %v760_v16 }
0x117e   :  { %v936_v18 = vpop.eup %935 }
0x117f   :  { %763 = vrot.lane.b32.xlu0 %v936_v18, %s1072_s2 }
0x1187   :  { %769 = vrot.lane.b32.xlu0 %v768_v61, %s1073_s3 }
0x11b7   :  { %v360_v20 = vpop.xlane.xlu2 %359 }
0x11b8   :  { %v785_v22 = vrot.slane %v360_v20, 2 }
0x11ba   :  { %v805_v25 = vsel %vm804_vm7, %v803_v24, %v785_v22 }
0x11bf   :  { %v602_v26 = vpop.permute.xlu2 %601 }
0x11c0   :  { %v604_v29 = vmul.f32 %v602_v26, %v599_v21 }
0x11c2   :  { %606 = vrot.lane.b32.xlu1 %v604_v29, %s1073_s3 }
0x11ca   :  { %690 = vrot.lane.b32.xlu1 %v688_v23, %s1073_s3 }
0x11d0   :  { %v439_v33 = vpop.permute.xlu1 %438 }
0x11d1   :  { %v442_v34 = vsel %vm441_vm8, %v439_v33, 0.0 }
0x11d2   :  { %443 = vadd.xlane.f32.xlu0 %v442_v34 }
0x11d8   :  { %v523_v35 = vpop.permute.xlu1 %522 }
0x11d9   :  { %v526_v36 = vsel %vm525_vm9, %v523_v35, 0.0 }
0x11da   :  { %527 = vadd.xlane.f32.xlu2 %v526_v36 }
0x11f1   :  { %v764_v37 = vpop.permute.xlu0 %763 }
0x11f2   :  { %v766_v57 = vmul.f32 %v764_v37, %v744_v0  ;;  %818 = vperm.xlu2 %870, %v79_v44  }
0x11f4   :  { %v767_v38 = vmax.f32 %v766_v57, 0.0 }
0x11f9   :  { %v770_v39 = vpop.permute.xlu0 %769 }
0x11fa   :  { %v772_v41 = vmul.f32 %v770_v39, %v767_v38 }
0x11fc   :  { %774 = vrot.lane.b32.xlu1 %v772_v41, %s1073_s3 }
0x1234   :  { %v607_v28 = vpop.permute.xlu1 %606 }
0x1235   :  { %v610_v42 = vsel %vm609_vm10, %v607_v28, 0.0 }
0x1236   :  { %611 = vadd.xlane.f32.xlu1 %v610_v42 }
0x123c   :  { %v691_v40 = vpop.permute.xlu1 %690 }
0x123d   :  { %v694_v43 = vsel %vm693_vm11, %v691_v40, 0.0 }
0x123e   :  { %695 = vadd.xlane.f32.xlu0 %v694_v43 }
0x1245   :  { %v444_v32 = vpop.xlane.xlu0 %443 }
0x1246   :  { %v788_v50 = vrot.slane %v444_v32, 3 }
0x1248   :  { %v807_v53 = vsel %vm806_vm13, %v805_v25, %v788_v50 }
0x124d   :  { %v528_v48 = vpop.xlane.xlu2 %527 }
0x124e   :  { %v791_v17 = vrot.slane %v528_v48, 4 }
0x1250   :  { %v809_v54 = vsel %vm808_vm14, %v807_v53, %v791_v17 }
0x1255   :  { %v819_v59 = vpop.permute.xlu2 %818 }
0x126e   :  { %v775_v3 = vpop.permute.xlu1 %774 }
0x126f   :  { %v778_v46 = vsel %vm777_vm12, %v775_v3, 0.0 }
0x1270   :  { %779 = vadd.xlane.f32.xlu0 %v778_v46 }
0x12a9   :  { %v612_v49 = vpop.xlane.xlu1 %611 }
0x12aa   :  { %v794_v51 = vrot.slane %v612_v49, 5 }
0x12ac   :  { %v811_v56 = vsel %vm810_vm15, %v809_v54, %v794_v51 }
0x12b1   :  { %v696_v47 = vpop.xlane.xlu0 %695 }
0x12b2   :  { %v797_v52 = vrot.slane %v696_v47, 6 }
0x12b4   :  { %v813_v60 = vsel %vm812_vm0, %v811_v56, %v797_v52 }
0x12e3   :  { %v780_v55 = vpop.xlane.xlu0 %779 }
0x12e4   :  { %v800_v58 = vrot.slane %v780_v55, 7 }
0x12e6   :  { %v815_v62 = vsel %vm814_vm5, %v813_v60, %v800_v58 }
0x12e7   :  { %v821_v63 = vadd.f32 %v819_v59, %v815_v62 }
0x12e9   :  { %823 = vst.msk [vmem:[#allocation10] sm:$0x1] %vm822_vm1, %v821_v63 }
0x12ea   :  { %834 = dma.vmem_to_hbm [thread:$0]  %s830_s10, 16, %s832_s13, [#allocation4]  }
0x12eb   :  { %1063 = dma.done.wait [#allocation4], 16  }
0x12ec   :  { %1064 = vsyncadd [#allocation4], 4294967280 }
0x12ed   :  { %839 = vsyncpa [#allocation3], 1 }
0x12ee   :  { %840 = vsyncpa [#allocation6], 1 }
0x12ef   :  { %841 = vsyncpa [#allocation9], 1 }
0x12f0   :  { %842 = vsyncpa [#allocation4], 1 }

</bundles_post_ra>
